<compile_context>
chip_gen: v7x
topology: tpu7x:2x2x1
jax: 0.10.0
libtpu: 0.0.40
codegen_flags: <defaults>
</compile_context>

<pallas_src>
import functools

import jax
import jax.numpy as jnp
from jax.experimental import pallas as pl
from jax.experimental.pallas import tpu as pltpu

VARCOEFF = 0.0  # self.varcoeff in __init__


def _vae_encoder_kernel(emb_ref, wih_ref, whh_ref, b_ref, wz_ref, bz_ref,
                        out_ref, ps_ref, xproj_scr):
    """Single-invocation LSTM encoder.

    emb_ref  : (s_len*batch, emb_dim)  time-major, batch padded to multiple of 8
    wih_ref  : (emb_dim, 4H)   W_ih^T
    whh_ref  : (H, 4H)         W_hh^T
    b_ref    : (1, 4H)         b_ih + b_hh
    wz_ref   : (H, 2Z)         W_h2z^T
    bz_ref   : (1, 2Z)
    out_ref  : (s_len*batch, H)   all hidden states (memory bank)
    ps_ref   : (batch, 2Z)        packed [mu | logvar]
    xproj_scr: (s_len*batch, 4H)  VMEM scratch for the hoisted input projection
    """
    H = whh_ref.shape[0]
    batch = ps_ref.shape[0]
    s_len = emb_ref.shape[0] // batch

    # Hoisted input projection + bias broadcast: one MXU push for all timesteps.
    xproj_scr[...] = (
        jnp.dot(emb_ref[...], wih_ref[...], preferred_element_type=jnp.float32)
        + b_ref[...])

    whh = whh_ref[...]  # keep weights loaded once, outside the recurrence

    def step(t, carry):
        h, c = carry
        base = pl.multiple_of(t * batch, batch)
        # Only the loop-carried matmul remains inside the recurrence.
        gates = (xproj_scr[pl.ds(base, batch), :]
                 + jnp.dot(h, whh, preferred_element_type=jnp.float32))
        # PyTorch LSTM gate order: i, f, g, o
        i_g = jax.nn.sigmoid(gates[:, 0 * H:1 * H])
        f_g = jax.nn.sigmoid(gates[:, 1 * H:2 * H])
        g_g = jnp.tanh(gates[:, 2 * H:3 * H])
        o_g = jax.nn.sigmoid(gates[:, 3 * H:4 * H])
        c_new = f_g * c + i_g * g_g
        h_new = o_g * jnp.tanh(c_new)
        out_ref[pl.ds(base, batch), :] = h_new
        return (h_new, c_new)

    h0 = jnp.zeros((batch, H), jnp.float32)
    # Short fixed trip count -> fully unroll for LLO scheduler visibility.
    h_T, _ = jax.lax.fori_loop(0, s_len, step, (h0, h0), unroll=True)

    # hhh = mean over layer axis (num_layers*dirs == 1) == h_T ; h2z linear.
    ps_ref[...] = (jnp.dot(h_T, wz_ref[...], preferred_element_type=jnp.float32)
                   + bz_ref[...])


@jax.jit
def vae_encoder_forward(emb, w_ih_t, w_hh_t, b_all, w_z_t, b_z, eps=None):
    """emb: (s_len, batch, emb_dim) f32. Returns (outputs, z, mu, logvar)."""
    s_len, batch, emb_dim = emb.shape
    hidden = w_hh_t.shape[0]
    z2 = w_z_t.shape[1]
    z_size = z2 // 2

    # Pad batch to the f32 sublane tile (8) for dense vreg layout / unmasked work.
    batch_p = ((batch + 7) // 8) * 8
    if batch_p != batch:
        emb = jnp.pad(emb, ((0, 0), (0, batch_p - batch), (0, 0)))
    emb2d = emb.reshape(s_len * batch_p, emb_dim)

    full2 = lambda i: (0, 0)
    out2d, ps = pl.pallas_call(
        _vae_encoder_kernel,
        out_shape=(
            jax.ShapeDtypeStruct((s_len * batch_p, hidden), jnp.float32),  # outputs
            jax.ShapeDtypeStruct((batch_p, z2), jnp.float32),              # [mu|logvar]
        ),
        grid=(1,),
        in_specs=[
            pl.BlockSpec((s_len * batch_p, emb_dim), full2),   # emb (flattened)
            pl.BlockSpec((emb_dim, 4 * hidden), full2),        # W_ih^T
            pl.BlockSpec((hidden, 4 * hidden), full2),         # W_hh^T
            pl.BlockSpec((1, 4 * hidden), full2),              # b_ih + b_hh
            pl.BlockSpec((hidden, z2), full2),                 # W_h2z^T
            pl.BlockSpec((1, z2), full2),                      # b_h2z
        ],
        out_specs=(
            pl.BlockSpec((s_len * batch_p, hidden), full2),
            pl.BlockSpec((batch_p, z2), full2),
        ),
        scratch_shapes=[
            pltpu.VMEM((s_len * batch_p, 4 * hidden), jnp.float32),  # hoisted X@W_ih
        ],
        compiler_params=pltpu.CompilerParams(
            dimension_semantics=("arbitrary",)),
    )(emb2d, w_ih_t, w_hh_t, b_all, w_z_t, b_z)

    outputs = out2d.reshape(s_len, batch_p, hidden)[:, :batch, :]
    ps = ps[:batch]
    mu = ps[:, :z_size]
    logvar = ps[:, z_size:]
    if VARCOEFF != 0.0:
        # General reparameterization path (module after Varianceanneal()).
        z = mu + eps * jnp.exp(logvar * 0.5) * VARCOEFF
    else:
        # Trace-time elision: z == mu; avoids dead exp and potential 0*inf NaN.
        z = mu
    return outputs, z, mu, logvar


def _ref_forward(emb, w_ih_t, w_hh_t, b_all, w_z_t, b_z, eps):
    """Pure-JAX reference (lax.scan LSTM) for a correctness sanity check."""
    def step(carry, x_t):
        h, c = carry
        gates = x_t @ w_ih_t + h @ w_hh_t + b_all[0]
        i, f, g, o = jnp.split(gates, 4, axis=-1)
        c = jax.nn.sigmoid(f) * c + jax.nn.sigmoid(i) * jnp.tanh(g)
        h = jax.nn.sigmoid(o) * jnp.tanh(c)
        return (h, c), h

    batch = emb.shape[1]
    hidden = w_hh_t.shape[0]
    h0 = jnp.zeros((batch, hidden), jnp.float32)
    (h_T, _), outs = jax.lax.scan(step, (h0, h0), emb)
    ps = h_T @ w_z_t + b_z[0]
    mu, logvar = jnp.split(ps, 2, axis=-1)
    z = mu + eps * jnp.exp(logvar * 0.5) * VARCOEFF
    return outs, z, mu, logvar


if __name__ == "__main__":
    # Small, TPU-friendly shapes.
    s_len, batch = 8, 4
    vocab, emb_dim = 50, 16
    hidden, z_size = 32, 8

    key = jax.random.PRNGKey(0)
    keys = jax.random.split(key, 9)

    # Deterministic parameter init (PyTorch-style uniform(-1/sqrt(H), 1/sqrt(H))).
    s = 1.0 / jnp.sqrt(hidden)
    emb_table = jax.random.normal(keys[0], (vocab, emb_dim), jnp.float32) * 0.1
    w_ih_t = jax.random.uniform(keys[1], (emb_dim, 4 * hidden), jnp.float32, -s, s)
    w_hh_t = jax.random.uniform(keys[2], (hidden, 4 * hidden), jnp.float32, -s, s)
    b_all = (jax.random.uniform(keys[3], (1, 4 * hidden), jnp.float32, -s, s)
             + jax.random.uniform(keys[4], (1, 4 * hidden), jnp.float32, -s, s))
    w_z_t = jax.random.uniform(keys[5], (hidden, 2 * z_size), jnp.float32, -s, s)
    b_z = jax.random.uniform(keys[6], (1, 2 * z_size), jnp.float32, -s, s)

    # Input tokens: (s_len, batch, 1) LongTensor equivalent -> squeeze feat axis.
    tokens = jax.random.randint(keys[7], (s_len, batch, 1), 0, vocab, jnp.int32)[..., 0]
    eps = jax.random.normal(keys[8], (batch, z_size), jnp.float32)

    # Embedding lookup (glue, plain JAX gather).
    emb = jnp.take(emb_table, tokens, axis=0)  # (s_len, batch, emb_dim)

    outputs, z, mu, logvar = vae_encoder_forward(
        emb, w_ih_t, w_hh_t, b_all, w_z_t, b_z, eps)
    jax.block_until_ready((outputs, z, mu, logvar))

    # Sanity check against pure-JAX reference.
    r_outs, r_z, r_mu, r_logvar = _ref_forward(
        emb, w_ih_t, w_hh_t, b_all, w_z_t, b_z, eps)
    assert outputs.shape == (s_len, batch, hidden)
    assert z.shape == mu.shape == logvar.shape == (batch, z_size)
    assert jnp.allclose(outputs, r_outs, atol=1e-5), "outputs mismatch"
    assert jnp.allclose(mu, r_mu, atol=1e-5), "mu mismatch"
    assert jnp.allclose(logvar, r_logvar, atol=1e-5), "logvar mismatch"
    assert jnp.allclose(z, r_z, atol=1e-5), "z mismatch"

    print("KERNEL_OK")
</pallas_src>

<mosaic_0001>
module attributes {stable_mosaic.version = 11 : i64} {
  func.func @_vae_encoder_kernel(%arg0: i32, %arg1: memref<64x16xf32, #tpu.memory_space<vmem>>, %arg2: memref<16x128xf32, #tpu.memory_space<vmem>>, %arg3: memref<32x128xf32, #tpu.memory_space<vmem>>, %arg4: memref<1x128xf32, #tpu.memory_space<vmem>>, %arg5: memref<32x16xf32, #tpu.memory_space<vmem>>, %arg6: memref<1x16xf32, #tpu.memory_space<vmem>>, %arg7: memref<64x32xf32, #tpu.memory_space<vmem>>, %arg8: memref<8x16xf32, #tpu.memory_space<vmem>>, %arg9: memref<64x128xf32, #tpu.memory_space<vmem>>) attributes {dimension_semantics = [#tpu.dimension_semantics<arbitrary>], iteration_bounds = array<i64: 1>, scalar_prefetch = 0 : i64, scratch_operands = 1 : i64, tpu.core_type = #tpu.core_type<tc>, window_params = [{pipeline_mode = #tpu.pipeline_mode<synchronous>, transform_indices = @transform_0, window_bounds = array<i64: 64, 16>}, {pipeline_mode = #tpu.pipeline_mode<synchronous>, transform_indices = @transform_1, window_bounds = array<i64: 16, 128>}, {pipeline_mode = #tpu.pipeline_mode<synchronous>, transform_indices = @transform_2, window_bounds = array<i64: 32, 128>}, {pipeline_mode = #tpu.pipeline_mode<synchronous>, transform_indices = @transform_3, window_bounds = array<i64: 1, 128>}, {pipeline_mode = #tpu.pipeline_mode<synchronous>, transform_indices = @transform_4, window_bounds = array<i64: 32, 16>}, {pipeline_mode = #tpu.pipeline_mode<synchronous>, transform_indices = @transform_5, window_bounds = array<i64: 1, 16>}, {pipeline_mode = #tpu.pipeline_mode<synchronous>, transform_indices = @transform_6, window_bounds = array<i64: 64, 32>}, {pipeline_mode = #tpu.pipeline_mode<synchronous>, transform_indices = @transform_7, window_bounds = array<i64: 8, 16>}]} {
    %c0 = arith.constant 0 : index
    %c0_0 = arith.constant 0 : index
    %0 = vector.load %arg1[%c0, %c0_0] : memref<64x16xf32, #tpu.memory_space<vmem>>, vector<64x16xf32>
    %c0_1 = arith.constant 0 : index
    %c0_2 = arith.constant 0 : index
    %1 = vector.load %arg2[%c0_1, %c0_2] : memref<16x128xf32, #tpu.memory_space<vmem>>, vector<16x128xf32>
    %cst = arith.constant dense<0.000000e+00> : vector<64x128xf32>
    %2 = tpu.matmul %0, %1, %cst {dimension_numbers = #tpu.dot_dimension_numbers<[1], [0], [0], [1], [0, 0, 1, 1], [], []>} : vector<64x16xf32>, vector<16x128xf32>, vector<64x128xf32> -> vector<64x128xf32>
    %c0_3 = arith.constant 0 : index
    %c0_4 = arith.constant 0 : index
    %3 = vector.load %arg4[%c0_3, %c0_4] : memref<1x128xf32, #tpu.memory_space<vmem>>, vector<1x128xf32>
    %4 = vector.broadcast %3 : vector<1x128xf32> to vector<64x128xf32>
    %5 = arith.addf %2, %4 : vector<64x128xf32>
    %c0_5 = arith.constant 0 : index
    %c0_6 = arith.constant 0 : index
    %6 = vector.load %arg9[%c0_5, %c0_6] : memref<64x128xf32, #tpu.memory_space<vmem>>, vector<64x128xf32>
    tpu.vector_store %arg9[%c0_5, %c0_6], %5 {strides = array<i32>} : memref<64x128xf32, #tpu.memory_space<vmem>>, vector<64x128xf32>,
    %c0_7 = arith.constant 0 : index
    %c0_8 = arith.constant 0 : index
    %7 = vector.load %arg3[%c0_7, %c0_8] : memref<32x128xf32, #tpu.memory_space<vmem>>, vector<32x128xf32>
    %cst_9 = arith.constant 0.000000e+00 : f32
    %8 = vector.broadcast %cst_9 : f32 to vector<8x32xf32>
    %c0_i32 = arith.constant 0 : i32
    %c8_i32 = arith.constant 8 : i32
    %9 = arith.muli %c0_i32, %c8_i32 : i32
    %10 = tpu.assume_multiple %9, 8 : i32
    %11 = arith.index_cast %10 : i32 to index
    %c0_10 = arith.constant 0 : index
    %12 = vector.load %arg9[%11, %c0_10] : memref<64x128xf32, #tpu.memory_space<vmem>>, vector<8x128xf32>
    %cst_11 = arith.constant dense<0.000000e+00> : vector<8x128xf32>
    %13 = tpu.matmul %8, %7, %cst_11 {dimension_numbers = #tpu.dot_dimension_numbers<[1], [0], [0], [1], [0, 0, 1, 1], [], []>} : vector<8x32xf32>, vector<32x128xf32>, vector<8x128xf32> -> vector<8x128xf32>
    %14 = arith.addf %12, %13 : vector<8x128xf32>
    %15 = vector.extract_strided_slice %14 {offsets = [0, 0], sizes = [8, 32], strides = [1, 1]} : vector<8x128xf32> to vector<8x32xf32>
    %16 = arith.negf %15 : vector<8x32xf32>
    %17 = math.exp %16 : vector<8x32xf32>
    %cst_12 = arith.constant 1.000000e+00 : f32
    %18 = vector.broadcast %cst_12 : f32 to vector<8x32xf32>
    %19 = arith.addf %18, %17 : vector<8x32xf32>
    %20 = arith.divf %18, %19 : vector<8x32xf32>
    %21 = vector.extract_strided_slice %14 {offsets = [0, 32], sizes = [8, 32], strides = [1, 1]} : vector<8x128xf32> to vector<8x32xf32>
    %22 = arith.negf %21 : vector<8x32xf32>
    %23 = math.exp %22 : vector<8x32xf32>
    %cst_13 = arith.constant 1.000000e+00 : f32
    %24 = vector.broadcast %cst_13 : f32 to vector<8x32xf32>
    %25 = arith.addf %24, %23 : vector<8x32xf32>
    %26 = arith.divf %24, %25 : vector<8x32xf32>
    %27 = vector.extract_strided_slice %14 {offsets = [0, 64], sizes = [8, 32], strides = [1, 1]} : vector<8x128xf32> to vector<8x32xf32>
    %28 = math.tanh %27 : vector<8x32xf32>
    %29 = vector.extract_strided_slice %14 {offsets = [0, 96], sizes = [8, 32], strides = [1, 1]} : vector<8x128xf32> to vector<8x32xf32>
    %30 = arith.negf %29 : vector<8x32xf32>
    %31 = math.exp %30 : vector<8x32xf32>
    %cst_14 = arith.constant 1.000000e+00 : f32
    %32 = vector.broadcast %cst_14 : f32 to vector<8x32xf32>
    %33 = arith.addf %32, %31 : vector<8x32xf32>
    %34 = arith.divf %32, %33 : vector<8x32xf32>
    %35 = arith.mulf %26, %8 : vector<8x32xf32>
    %36 = arith.mulf %20, %28 : vector<8x32xf32>
    %37 = arith.addf %35, %36 : vector<8x32xf32>
    %38 = math.tanh %37 : vector<8x32xf32>
    %39 = arith.mulf %34, %38 : vector<8x32xf32>
    %40 = arith.index_cast %10 : i32 to index
    %c0_15 = arith.constant 0 : index
    %41 = vector.load %arg7[%40, %c0_15] : memref<64x32xf32, #tpu.memory_space<vmem>>, vector<8x32xf32>
    tpu.vector_store %arg7[%40, %c0_15], %39 {strides = array<i32>} : memref<64x32xf32, #tpu.memory_space<vmem>>, vector<8x32xf32>,
    %c1_i32 = arith.constant 1 : i32
    %c8_i32_16 = arith.constant 8 : i32
    %42 = arith.muli %c1_i32, %c8_i32_16 : i32
    %43 = tpu.assume_multiple %42, 8 : i32
    %44 = arith.index_cast %43 : i32 to index
    %c0_17 = arith.constant 0 : index
    %45 = vector.load %arg9[%44, %c0_17] : memref<64x128xf32, #tpu.memory_space<vmem>>, vector<8x128xf32>
    %cst_18 = arith.constant dense<0.000000e+00> : vector<8x128xf32>
    %46 = tpu.matmul %39, %7, %cst_18 {dimension_numbers = #tpu.dot_dimension_numbers<[1], [0], [0], [1], [0, 0, 1, 1], [], []>} : vector<8x32xf32>, vector<32x128xf32>, vector<8x128xf32> -> vector<8x128xf32>
    %47 = arith.addf %45, %46 : vector<8x128xf32>
    %48 = vector.extract_strided_slice %47 {offsets = [0, 0], sizes = [8, 32], strides = [1, 1]} : vector<8x128xf32> to vector<8x32xf32>
    %49 = arith.negf %48 : vector<8x32xf32>
    %50 = math.exp %49 : vector<8x32xf32>
    %cst_19 = arith.constant 1.000000e+00 : f32
    %51 = vector.broadcast %cst_19 : f32 to vector<8x32xf32>
    %52 = arith.addf %51, %50 : vector<8x32xf32>
    %53 = arith.divf %51, %52 : vector<8x32xf32>
    %54 = vector.extract_strided_slice %47 {offsets = [0, 32], sizes = [8, 32], strides = [1, 1]} : vector<8x128xf32> to vector<8x32xf32>
    %55 = arith.negf %54 : vector<8x32xf32>
    %56 = math.exp %55 : vector<8x32xf32>
    %cst_20 = arith.constant 1.000000e+00 : f32
    %57 = vector.broadcast %cst_20 : f32 to vector<8x32xf32>
    %58 = arith.addf %57, %56 : vector<8x32xf32>
    %59 = arith.divf %57, %58 : vector<8x32xf32>
    %60 = vector.extract_strided_slice %47 {offsets = [0, 64], sizes = [8, 32], strides = [1, 1]} : vector<8x128xf32> to vector<8x32xf32>
    %61 = math.tanh %60 : vector<8x32xf32>
    %62 = vector.extract_strided_slice %47 {offsets = [0, 96], sizes = [8, 32], strides = [1, 1]} : vector<8x128xf32> to vector<8x32xf32>
    %63 = arith.negf %62 : vector<8x32xf32>
    %64 = math.exp %63 : vector<8x32xf32>
    %cst_21 = arith.constant 1.000000e+00 : f32
    %65 = vector.broadcast %cst_21 : f32 to vector<8x32xf32>
    %66 = arith.addf %65, %64 : vector<8x32xf32>
    %67 = arith.divf %65, %66 : vector<8x32xf32>
    %68 = arith.mulf %59, %37 : vector<8x32xf32>
    %69 = arith.mulf %53, %61 : vector<8x32xf32>
    %70 = arith.addf %68, %69 : vector<8x32xf32>
    %71 = math.tanh %70 : vector<8x32xf32>
    %72 = arith.mulf %67, %71 : vector<8x32xf32>
    %73 = arith.index_cast %43 : i32 to index
    %c0_22 = arith.constant 0 : index
    %74 = vector.load %arg7[%73, %c0_22] : memref<64x32xf32, #tpu.memory_space<vmem>>, vector<8x32xf32>
    tpu.vector_store %arg7[%73, %c0_22], %72 {strides = array<i32>} : memref<64x32xf32, #tpu.memory_space<vmem>>, vector<8x32xf32>,
    %c2_i32 = arith.constant 2 : i32
    %c8_i32_23 = arith.constant 8 : i32
    %75 = arith.muli %c2_i32, %c8_i32_23 : i32
    %76 = tpu.assume_multiple %75, 8 : i32
    %77 = arith.index_cast %76 : i32 to index
    %c0_24 = arith.constant 0 : index
    %78 = vector.load %arg9[%77, %c0_24] : memref<64x128xf32, #tpu.memory_space<vmem>>, vector<8x128xf32>
    %cst_25 = arith.constant dense<0.000000e+00> : vector<8x128xf32>
    %79 = tpu.matmul %72, %7, %cst_25 {dimension_numbers = #tpu.dot_dimension_numbers<[1], [0], [0], [1], [0, 0, 1, 1], [], []>} : vector<8x32xf32>, vector<32x128xf32>, vector<8x128xf32> -> vector<8x128xf32>
    %80 = arith.addf %78, %79 : vector<8x128xf32>
    %81 = vector.extract_strided_slice %80 {offsets = [0, 0], sizes = [8, 32], strides = [1, 1]} : vector<8x128xf32> to vector<8x32xf32>
    %82 = arith.negf %81 : vector<8x32xf32>
    %83 = math.exp %82 : vector<8x32xf32>
    %cst_26 = arith.constant 1.000000e+00 : f32
    %84 = vector.broadcast %cst_26 : f32 to vector<8x32xf32>
    %85 = arith.addf %84, %83 : vector<8x32xf32>
    %86 = arith.divf %84, %85 : vector<8x32xf32>
    %87 = vector.extract_strided_slice %80 {offsets = [0, 32], sizes = [8, 32], strides = [1, 1]} : vector<8x128xf32> to vector<8x32xf32>
    %88 = arith.negf %87 : vector<8x32xf32>
    %89 = math.exp %88 : vector<8x32xf32>
    %cst_27 = arith.constant 1.000000e+00 : f32
    %90 = vector.broadcast %cst_27 : f32 to vector<8x32xf32>
    %91 = arith.addf %90, %89 : vector<8x32xf32>
    %92 = arith.divf %90, %91 : vector<8x32xf32>
    %93 = vector.extract_strided_slice %80 {offsets = [0, 64], sizes = [8, 32], strides = [1, 1]} : vector<8x128xf32> to vector<8x32xf32>
    %94 = math.tanh %93 : vector<8x32xf32>
    %95 = vector.extract_strided_slice %80 {offsets = [0, 96], sizes = [8, 32], strides = [1, 1]} : vector<8x128xf32> to vector<8x32xf32>
    %96 = arith.negf %95 : vector<8x32xf32>
    %97 = math.exp %96 : vector<8x32xf32>
    %cst_28 = arith.constant 1.000000e+00 : f32
    %98 = vector.broadcast %cst_28 : f32 to vector<8x32xf32>
    %99 = arith.addf %98, %97 : vector<8x32xf32>
    %100 = arith.divf %98, %99 : vector<8x32xf32>
    %101 = arith.mulf %92, %70 : vector<8x32xf32>
    %102 = arith.mulf %86, %94 : vector<8x32xf32>
    %103 = arith.addf %101, %102 : vector<8x32xf32>
    %104 = math.tanh %103 : vector<8x32xf32>
    %105 = arith.mulf %100, %104 : vector<8x32xf32>
    %106 = arith.index_cast %76 : i32 to index
    %c0_29 = arith.constant 0 : index
    %107 = vector.load %arg7[%106, %c0_29] : memref<64x32xf32, #tpu.memory_space<vmem>>, vector<8x32xf32>
    tpu.vector_store %arg7[%106, %c0_29], %105 {strides = array<i32>} : memref<64x32xf32, #tpu.memory_space<vmem>>, vector<8x32xf32>,
    %c3_i32 = arith.constant 3 : i32
    %c8_i32_30 = arith.constant 8 : i32
    %108 = arith.muli %c3_i32, %c8_i32_30 : i32
    %109 = tpu.assume_multiple %108, 8 : i32
    %110 = arith.index_cast %109 : i32 to index
    %c0_31 = arith.constant 0 : index
    %111 = vector.load %arg9[%110, %c0_31] : memref<64x128xf32, #tpu.memory_space<vmem>>, vector<8x128xf32>
    %cst_32 = arith.constant dense<0.000000e+00> : vector<8x128xf32>
    %112 = tpu.matmul %105, %7, %cst_32 {dimension_numbers = #tpu.dot_dimension_numbers<[1], [0], [0], [1], [0, 0, 1, 1], [], []>} : vector<8x32xf32>, vector<32x128xf32>, vector<8x128xf32> -> vector<8x128xf32>
    %113 = arith.addf %111, %112 : vector<8x128xf32>
    %114 = vector.extract_strided_slice %113 {offsets = [0, 0], sizes = [8, 32], strides = [1, 1]} : vector<8x128xf32> to vector<8x32xf32>
    %115 = arith.negf %114 : vector<8x32xf32>
    %116 = math.exp %115 : vector<8x32xf32>
    %cst_33 = arith.constant 1.000000e+00 : f32
    %117 = vector.broadcast %cst_33 : f32 to vector<8x32xf32>
    %118 = arith.addf %117, %116 : vector<8x32xf32>
    %119 = arith.divf %117, %118 : vector<8x32xf32>
    %120 = vector.extract_strided_slice %113 {offsets = [0, 32], sizes = [8, 32], strides = [1, 1]} : vector<8x128xf32> to vector<8x32xf32>
    %121 = arith.negf %120 : vector<8x32xf32>
    %122 = math.exp %121 : vector<8x32xf32>
    %cst_34 = arith.constant 1.000000e+00 : f32
    %123 = vector.broadcast %cst_34 : f32 to vector<8x32xf32>
    %124 = arith.addf %123, %122 : vector<8x32xf32>
    %125 = arith.divf %123, %124 : vector<8x32xf32>
    %126 = vector.extract_strided_slice %113 {offsets = [0, 64], sizes = [8, 32], strides = [1, 1]} : vector<8x128xf32> to vector<8x32xf32>
    %127 = math.tanh %126 : vector<8x32xf32>
    %128 = vector.extract_strided_slice %113 {offsets = [0, 96], sizes = [8, 32], strides = [1, 1]} : vector<8x128xf32> to vector<8x32xf32>
    %129 = arith.negf %128 : vector<8x32xf32>
    %130 = math.exp %129 : vector<8x32xf32>
    %cst_35 = arith.constant 1.000000e+00 : f32
    %131 = vector.broadcast %cst_35 : f32 to vector<8x32xf32>
    %132 = arith.addf %131, %130 : vector<8x32xf32>
    %133 = arith.divf %131, %132 : vector<8x32xf32>
    %134 = arith.mulf %125, %103 : vector<8x32xf32>
    %135 = arith.mulf %119, %127 : vector<8x32xf32>
    %136 = arith.addf %134, %135 : vector<8x32xf32>
    %137 = math.tanh %136 : vector<8x32xf32>
    %138 = arith.mulf %133, %137 : vector<8x32xf32>
    %139 = arith.index_cast %109 : i32 to index
    %c0_36 = arith.constant 0 : index
    %140 = vector.load %arg7[%139, %c0_36] : memref<64x32xf32, #tpu.memory_space<vmem>>, vector<8x32xf32>
    tpu.vector_store %arg7[%139, %c0_36], %138 {strides = array<i32>} : memref<64x32xf32, #tpu.memory_space<vmem>>, vector<8x32xf32>,
    %c4_i32 = arith.constant 4 : i32
    %c8_i32_37 = arith.constant 8 : i32
    %141 = arith.muli %c4_i32, %c8_i32_37 : i32
    %142 = tpu.assume_multiple %141, 8 : i32
    %143 = arith.index_cast %142 : i32 to index
    %c0_38 = arith.constant 0 : index
    %144 = vector.load %arg9[%143, %c0_38] : memref<64x128xf32, #tpu.memory_space<vmem>>, vector<8x128xf32>
    %cst_39 = arith.constant dense<0.000000e+00> : vector<8x128xf32>
    %145 = tpu.matmul %138, %7, %cst_39 {dimension_numbers = #tpu.dot_dimension_numbers<[1], [0], [0], [1], [0, 0, 1, 1], [], []>} : vector<8x32xf32>, vector<32x128xf32>, vector<8x128xf32> -> vector<8x128xf32>
    %146 = arith.addf %144, %145 : vector<8x128xf32>
    %147 = vector.extract_strided_slice %146 {offsets = [0, 0], sizes = [8, 32], strides = [1, 1]} : vector<8x128xf32> to vector<8x32xf32>
    %148 = arith.negf %147 : vector<8x32xf32>
    %149 = math.exp %148 : vector<8x32xf32>
    %cst_40 = arith.constant 1.000000e+00 : f32
    %150 = vector.broadcast %cst_40 : f32 to vector<8x32xf32>
    %151 = arith.addf %150, %149 : vector<8x32xf32>
    %152 = arith.divf %150, %151 : vector<8x32xf32>
    %153 = vector.extract_strided_slice %146 {offsets = [0, 32], sizes = [8, 32], strides = [1, 1]} : vector<8x128xf32> to vector<8x32xf32>
    %154 = arith.negf %153 : vector<8x32xf32>
    %155 = math.exp %154 : vector<8x32xf32>
    %cst_41 = arith.constant 1.000000e+00 : f32
    %156 = vector.broadcast %cst_41 : f32 to vector<8x32xf32>
    %157 = arith.addf %156, %155 : vector<8x32xf32>
    %158 = arith.divf %156, %157 : vector<8x32xf32>
    %159 = vector.extract_strided_slice %146 {offsets = [0, 64], sizes = [8, 32], strides = [1, 1]} : vector<8x128xf32> to vector<8x32xf32>
    %160 = math.tanh %159 : vector<8x32xf32>
    %161 = vector.extract_strided_slice %146 {offsets = [0, 96], sizes = [8, 32], strides = [1, 1]} : vector<8x128xf32> to vector<8x32xf32>
    %162 = arith.negf %161 : vector<8x32xf32>
    %163 = math.exp %162 : vector<8x32xf32>
    %cst_42 = arith.constant 1.000000e+00 : f32
    %164 = vector.broadcast %cst_42 : f32 to vector<8x32xf32>
    %165 = arith.addf %164, %163 : vector<8x32xf32>
    %166 = arith.divf %164, %165 : vector<8x32xf32>
    %167 = arith.mulf %158, %136 : vector<8x32xf32>
    %168 = arith.mulf %152, %160 : vector<8x32xf32>
    %169 = arith.addf %167, %168 : vector<8x32xf32>
    %170 = math.tanh %169 : vector<8x32xf32>
    %171 = arith.mulf %166, %170 : vector<8x32xf32>
    %172 = arith.index_cast %142 : i32 to index
    %c0_43 = arith.constant 0 : index
    %173 = vector.load %arg7[%172, %c0_43] : memref<64x32xf32, #tpu.memory_space<vmem>>, vector<8x32xf32>
    tpu.vector_store %arg7[%172, %c0_43], %171 {strides = array<i32>} : memref<64x32xf32, #tpu.memory_space<vmem>>, vector<8x32xf32>,
    %c5_i32 = arith.constant 5 : i32
    %c8_i32_44 = arith.constant 8 : i32
    %174 = arith.muli %c5_i32, %c8_i32_44 : i32
    %175 = tpu.assume_multiple %174, 8 : i32
    %176 = arith.index_cast %175 : i32 to index
    %c0_45 = arith.constant 0 : index
    %177 = vector.load %arg9[%176, %c0_45] : memref<64x128xf32, #tpu.memory_space<vmem>>, vector<8x128xf32>
    %cst_46 = arith.constant dense<0.000000e+00> : vector<8x128xf32>
    %178 = tpu.matmul %171, %7, %cst_46 {dimension_numbers = #tpu.dot_dimension_numbers<[1], [0], [0], [1], [0, 0, 1, 1], [], []>} : vector<8x32xf32>, vector<32x128xf32>, vector<8x128xf32> -> vector<8x128xf32>
    %179 = arith.addf %177, %178 : vector<8x128xf32>
    %180 = vector.extract_strided_slice %179 {offsets = [0, 0], sizes = [8, 32], strides = [1, 1]} : vector<8x128xf32> to vector<8x32xf32>
    %181 = arith.negf %180 : vector<8x32xf32>
    %182 = math.exp %181 : vector<8x32xf32>
    %cst_47 = arith.constant 1.000000e+00 : f32
    %183 = vector.broadcast %cst_47 : f32 to vector<8x32xf32>
    %184 = arith.addf %183, %182 : vector<8x32xf32>
    %185 = arith.divf %183, %184 : vector<8x32xf32>
    %186 = vector.extract_strided_slice %179 {offsets = [0, 32], sizes = [8, 32], strides = [1, 1]} : vector<8x128xf32> to vector<8x32xf32>
    %187 = arith.negf %186 : vector<8x32xf32>
    %188 = math.exp %187 : vector<8x32xf32>
    %cst_48 = arith.constant 1.000000e+00 : f32
    %189 = vector.broadcast %cst_48 : f32 to vector<8x32xf32>
    %190 = arith.addf %189, %188 : vector<8x32xf32>
    %191 = arith.divf %189, %190 : vector<8x32xf32>
    %192 = vector.extract_strided_slice %179 {offsets = [0, 64], sizes = [8, 32], strides = [1, 1]} : vector<8x128xf32> to vector<8x32xf32>
    %193 = math.tanh %192 : vector<8x32xf32>
    %194 = vector.extract_strided_slice %179 {offsets = [0, 96], sizes = [8, 32], strides = [1, 1]} : vector<8x128xf32> to vector<8x32xf32>
    %195 = arith.negf %194 : vector<8x32xf32>
    %196 = math.exp %195 : vector<8x32xf32>
    %cst_49 = arith.constant 1.000000e+00 : f32
    %197 = vector.broadcast %cst_49 : f32 to vector<8x32xf32>
    %198 = arith.addf %197, %196 : vector<8x32xf32>
    %199 = arith.divf %197, %198 : vector<8x32xf32>
    %200 = arith.mulf %191, %169 : vector<8x32xf32>
    %201 = arith.mulf %185, %193 : vector<8x32xf32>
    %202 = arith.addf %200, %201 : vector<8x32xf32>
    %203 = math.tanh %202 : vector<8x32xf32>
    %204 = arith.mulf %199, %203 : vector<8x32xf32>
    %205 = arith.index_cast %175 : i32 to index
    %c0_50 = arith.constant 0 : index
    %206 = vector.load %arg7[%205, %c0_50] : memref<64x32xf32, #tpu.memory_space<vmem>>, vector<8x32xf32>
    tpu.vector_store %arg7[%205, %c0_50], %204 {strides = array<i32>} : memref<64x32xf32, #tpu.memory_space<vmem>>, vector<8x32xf32>,
    %c6_i32 = arith.constant 6 : i32
    %c8_i32_51 = arith.constant 8 : i32
    %207 = arith.muli %c6_i32, %c8_i32_51 : i32
    %208 = tpu.assume_multiple %207, 8 : i32
    %209 = arith.index_cast %208 : i32 to index
    %c0_52 = arith.constant 0 : index
    %210 = vector.load %arg9[%209, %c0_52] : memref<64x128xf32, #tpu.memory_space<vmem>>, vector<8x128xf32>
    %cst_53 = arith.constant dense<0.000000e+00> : vector<8x128xf32>
    %211 = tpu.matmul %204, %7, %cst_53 {dimension_numbers = #tpu.dot_dimension_numbers<[1], [0], [0], [1], [0, 0, 1, 1], [], []>} : vector<8x32xf32>, vector<32x128xf32>, vector<8x128xf32> -> vector<8x128xf32>
    %212 = arith.addf %210, %211 : vector<8x128xf32>
    %213 = vector.extract_strided_slice %212 {offsets = [0, 0], sizes = [8, 32], strides = [1, 1]} : vector<8x128xf32> to vector<8x32xf32>
    %214 = arith.negf %213 : vector<8x32xf32>
    %215 = math.exp %214 : vector<8x32xf32>
    %cst_54 = arith.constant 1.000000e+00 : f32
    %216 = vector.broadcast %cst_54 : f32 to vector<8x32xf32>
    %217 = arith.addf %216, %215 : vector<8x32xf32>
    %218 = arith.divf %216, %217 : vector<8x32xf32>
    %219 = vector.extract_strided_slice %212 {offsets = [0, 32], sizes = [8, 32], strides = [1, 1]} : vector<8x128xf32> to vector<8x32xf32>
    %220 = arith.negf %219 : vector<8x32xf32>
    %221 = math.exp %220 : vector<8x32xf32>
    %cst_55 = arith.constant 1.000000e+00 : f32
    %222 = vector.broadcast %cst_55 : f32 to vector<8x32xf32>
    %223 = arith.addf %222, %221 : vector<8x32xf32>
    %224 = arith.divf %222, %223 : vector<8x32xf32>
    %225 = vector.extract_strided_slice %212 {offsets = [0, 64], sizes = [8, 32], strides = [1, 1]} : vector<8x128xf32> to vector<8x32xf32>
    %226 = math.tanh %225 : vector<8x32xf32>
    %227 = vector.extract_strided_slice %212 {offsets = [0, 96], sizes = [8, 32], strides = [1, 1]} : vector<8x128xf32> to vector<8x32xf32>
    %228 = arith.negf %227 : vector<8x32xf32>
    %229 = math.exp %228 : vector<8x32xf32>
    %cst_56 = arith.constant 1.000000e+00 : f32
    %230 = vector.broadcast %cst_56 : f32 to vector<8x32xf32>
    %231 = arith.addf %230, %229 : vector<8x32xf32>
    %232 = arith.divf %230, %231 : vector<8x32xf32>
    %233 = arith.mulf %224, %202 : vector<8x32xf32>
    %234 = arith.mulf %218, %226 : vector<8x32xf32>
    %235 = arith.addf %233, %234 : vector<8x32xf32>
    %236 = math.tanh %235 : vector<8x32xf32>
    %237 = arith.mulf %232, %236 : vector<8x32xf32>
    %238 = arith.index_cast %208 : i32 to index
    %c0_57 = arith.constant 0 : index
    %239 = vector.load %arg7[%238, %c0_57] : memref<64x32xf32, #tpu.memory_space<vmem>>, vector<8x32xf32>
    tpu.vector_store %arg7[%238, %c0_57], %237 {strides = array<i32>} : memref<64x32xf32, #tpu.memory_space<vmem>>, vector<8x32xf32>,
    %c7_i32 = arith.constant 7 : i32
    %c8_i32_58 = arith.constant 8 : i32
    %240 = arith.muli %c7_i32, %c8_i32_58 : i32
    %241 = tpu.assume_multiple %240, 8 : i32
    %242 = arith.index_cast %241 : i32 to index
    %c0_59 = arith.constant 0 : index
    %243 = vector.load %arg9[%242, %c0_59] : memref<64x128xf32, #tpu.memory_space<vmem>>, vector<8x128xf32>
    %cst_60 = arith.constant dense<0.000000e+00> : vector<8x128xf32>
    %244 = tpu.matmul %237, %7, %cst_60 {dimension_numbers = #tpu.dot_dimension_numbers<[1], [0], [0], [1], [0, 0, 1, 1], [], []>} : vector<8x32xf32>, vector<32x128xf32>, vector<8x128xf32> -> vector<8x128xf32>
    %245 = arith.addf %243, %244 : vector<8x128xf32>
    %246 = vector.extract_strided_slice %245 {offsets = [0, 0], sizes = [8, 32], strides = [1, 1]} : vector<8x128xf32> to vector<8x32xf32>
    %247 = arith.negf %246 : vector<8x32xf32>
    %248 = math.exp %247 : vector<8x32xf32>
    %cst_61 = arith.constant 1.000000e+00 : f32
    %249 = vector.broadcast %cst_61 : f32 to vector<8x32xf32>
    %250 = arith.addf %249, %248 : vector<8x32xf32>
    %251 = arith.divf %249, %250 : vector<8x32xf32>
    %252 = vector.extract_strided_slice %245 {offsets = [0, 32], sizes = [8, 32], strides = [1, 1]} : vector<8x128xf32> to vector<8x32xf32>
    %253 = arith.negf %252 : vector<8x32xf32>
    %254 = math.exp %253 : vector<8x32xf32>
    %cst_62 = arith.constant 1.000000e+00 : f32
    %255 = vector.broadcast %cst_62 : f32 to vector<8x32xf32>
    %256 = arith.addf %255, %254 : vector<8x32xf32>
    %257 = arith.divf %255, %256 : vector<8x32xf32>
    %258 = vector.extract_strided_slice %245 {offsets = [0, 64], sizes = [8, 32], strides = [1, 1]} : vector<8x128xf32> to vector<8x32xf32>
    %259 = math.tanh %258 : vector<8x32xf32>
    %260 = vector.extract_strided_slice %245 {offsets = [0, 96], sizes = [8, 32], strides = [1, 1]} : vector<8x128xf32> to vector<8x32xf32>
    %261 = arith.negf %260 : vector<8x32xf32>
    %262 = math.exp %261 : vector<8x32xf32>
    %cst_63 = arith.constant 1.000000e+00 : f32
    %263 = vector.broadcast %cst_63 : f32 to vector<8x32xf32>
    %264 = arith.addf %263, %262 : vector<8x32xf32>
    %265 = arith.divf %263, %264 : vector<8x32xf32>
    %266 = arith.mulf %257, %235 : vector<8x32xf32>
    %267 = arith.mulf %251, %259 : vector<8x32xf32>
    %268 = arith.addf %266, %267 : vector<8x32xf32>
    %269 = math.tanh %268 : vector<8x32xf32>
    %270 = arith.mulf %265, %269 : vector<8x32xf32>
    %271 = arith.index_cast %241 : i32 to index
    %c0_64 = arith.constant 0 : index
    %272 = vector.load %arg7[%271, %c0_64] : memref<64x32xf32, #tpu.memory_space<vmem>>, vector<8x32xf32>
    tpu.vector_store %arg7[%271, %c0_64], %270 {strides = array<i32>} : memref<64x32xf32, #tpu.memory_space<vmem>>, vector<8x32xf32>,
    %c8_i32_65 = arith.constant 8 : i32
    %c0_66 = arith.constant 0 : index
    %c0_67 = arith.constant 0 : index
    %273 = vector.load %arg5[%c0_66, %c0_67] : memref<32x16xf32, #tpu.memory_space<vmem>>, vector<32x16xf32>
    %cst_68 = arith.constant dense<0.000000e+00> : vector<8x16xf32>
    %274 = tpu.matmul %270, %273, %cst_68 {dimension_numbers = #tpu.dot_dimension_numbers<[1], [0], [0], [1], [0, 0, 1, 1], [], []>} : vector<8x32xf32>, vector<32x16xf32>, vector<8x16xf32> -> vector<8x16xf32>
    %c0_69 = arith.constant 0 : index
    %c0_70 = arith.constant 0 : index
    %275 = vector.load %arg6[%c0_69, %c0_70] : memref<1x16xf32, #tpu.memory_space<vmem>>, vector<1x16xf32>
    %276 = vector.broadcast %275 : vector<1x16xf32> to vector<8x16xf32>
    %277 = arith.addf %274, %276 : vector<8x16xf32>
    %c0_71 = arith.constant 0 : index
    %c0_72 = arith.constant 0 : index
    %278 = vector.load %arg8[%c0_71, %c0_72] : memref<8x16xf32, #tpu.memory_space<vmem>>, vector<8x16xf32>
    tpu.vector_store %arg8[%c0_71, %c0_72], %277 {strides = array<i32>} : memref<8x16xf32, #tpu.memory_space<vmem>>, vector<8x16xf32>,
    return
  }
  func.func @transform_0(%arg0: i32) -> (i32, i32) {
    %c0_i32 = arith.constant 0 : i32
    %c0_i32_0 = arith.constant 0 : i32
    %c0_i32_1 = arith.constant 0 : i32
    return %c0_i32, %c0_i32_0 : i32, i32
  }
  func.func @transform_1(%arg0: i32) -> (i32, i32) {
    %c0_i32 = arith.constant 0 : i32
    %c0_i32_0 = arith.constant 0 : i32
    %c0_i32_1 = arith.constant 0 : i32
    return %c0_i32, %c0_i32_0 : i32, i32
  }
  func.func @transform_2(%arg0: i32) -> (i32, i32) {
    %c0_i32 = arith.constant 0 : i32
    %c0_i32_0 = arith.constant 0 : i32
    %c0_i32_1 = arith.constant 0 : i32
    return %c0_i32, %c0_i32_0 : i32, i32
  }
  func.func @transform_3(%arg0: i32) -> (i32, i32) {
    %c0_i32 = arith.constant 0 : i32
    %c0_i32_0 = arith.constant 0 : i32
    %c0_i32_1 = arith.constant 0 : i32
    return %c0_i32, %c0_i32_0 : i32, i32
  }
  func.func @transform_4(%arg0: i32) -> (i32, i32) {
    %c0_i32 = arith.constant 0 : i32
    %c0_i32_0 = arith.constant 0 : i32
    %c0_i32_1 = arith.constant 0 : i32
    return %c0_i32, %c0_i32_0 : i32, i32
  }
  func.func @transform_5(%arg0: i32) -> (i32, i32) {
    %c0_i32 = arith.constant 0 : i32
    %c0_i32_0 = arith.constant 0 : i32
    %c0_i32_1 = arith.constant 0 : i32
    return %c0_i32, %c0_i32_0 : i32, i32
  }
  func.func @transform_6(%arg0: i32) -> (i32, i32) {
    %c0_i32 = arith.constant 0 : i32
    %c0_i32_0 = arith.constant 0 : i32
    %c0_i32_1 = arith.constant 0 : i32
    return %c0_i32, %c0_i32_0 : i32, i32
  }
  func.func @transform_7(%arg0: i32) -> (i32, i32) {
    %c0_i32 = arith.constant 0 : i32
    %c0_i32_0 = arith.constant 0 : i32
    %c0_i32_1 = arith.constant 0 : i32
    return %c0_i32, %c0_i32_0 : i32, i32
  }
}

</mosaic_0001>

<bundles_post_ra>
// kernel: vae_encoder_forward.1
= control target key start
LH: loop header
LB: loop body
LE: loop exit
PB: predicated region body
PF: predicated region fallthrough
CT: control target
= control target key end

     0   :  { %vm42_vm0 = vcmask 130048   ;;  %v1446_v0 = vmov 0.0|0.0   ;;  %vm1447_vm1 = vmmov 0   ;;  %v1448_v4 = vmov 0.0   ;;  %s1449_s17 = smov 64   ;;  %s1714_s1 = inlined_call_operand.vmem [shape: f32[16,128], index: 1, kind: input, shape index: {}]   ;;  %s1715_s2 = inlined_call_operand.vmem [shape: f32[32,128], index: 2, kind: input, shape index: {}]   ;;  %s1716_s0 = inlined_call_operand.vmem [shape: f32[64,16], index: 0, kind: input, shape index: {}]   ;;  %s1717_s3 = inlined_call_operand.vmem [shape: f32[1,128], index: 3, kind: input, shape index: {}]   ;;  %s1718_s6 = inlined_call_operand.vmem [shape: f32[64,32], index: 6, kind: output, shape index: {0}]   ;;  %s1719_s4 = inlined_call_operand.vmem [shape: f32[32,16], index: 4, kind: input, shape index: {}]   ;;  %s1720_s5 = inlined_call_operand.vmem [shape: f32[1,16], index: 5, kind: input, shape index: {}]   ;;  %s1721_s7 = inlined_call_operand.vmem [shape: f32[8,16], index: 7, kind: output, shape index: {1}]  }
   0x1   :  { %1323 = vmatprep.subr.bf16.mxu1 %v1446_v0  ;;  %v33_v1 = vld [vmem:[%s1714_s1] sm:$0xff]  ;;  %v34_v2 = vld [vmem:[%s1714_s1 + $0x8] sm:$0xff]  ;;  %1228 = vmatprep.mubr.msk.f32.mxu1 %vm1447_vm1, %v1448_v4  ;;  %v182_v9 = vld [vmem:[%s1715_s2 + $0x10] sm:$0xff]  ;;  %vm185_vm2 = vcmask 261120  }
   0x2   :  { %v180_v3 = vld [vmem:[%s1715_s2] sm:$0xff]  ;;  %v1319_v5 = vpack.c.bf16 %v34_v2, %v33_v1  ;;  %v181_v6 = vld [vmem:[%s1715_s2 + $0x8] sm:$0xff]  ;;  %v183_v10 = vld [vmem:[%s1715_s2 + $0x18] sm:$0xff] }
   0x3   :  { %v25_v7 = vld [vmem:[%s1716_s0] sm:$0xff]  ;;  %v1509_v8 = vpack.c.bf16 %v181_v6, %v180_v3  ;;  %v26_v11 = vld [vmem:[%s1716_s0 + $0x8] sm:$0xff]  ;;  %v1522_v12 = vpack.c.bf16 %v183_v10, %v182_v9  ;;  %v27_v48 = vld [vmem:[%s1716_s0 + $0x10] sm:$0xff] }
   0x4   :  { %1208 = vmatprep.mubr.msk.f32.mxu0 %vm42_vm0, %v25_v7  ;;  %1320 = vmatprep.subr.bf16.mxu0 %v1319_v5  ;;  %v1543_v13 = vld [vmem:[%s1717_s3] ss:$0 sm:$0xff]  ;;  %s1450_s3 = smov 32   ;;  %v28_v49 = vld [vmem:[%s1716_s0 + $0x18] sm:$0xff]  ;;  %v30_v51 = vld [vmem:[%s1716_s0 + $0x28] sm:$0xff] }
   0x5   :  { %1325 = vmatpush3.bf16.msra.mxu1 %v1509_v8  ;;  %1322 = vmatpush3.bf16.msra.mxu0 %v1319_v5  ;;  %v29_v50 = vld [vmem:[%s1716_s0 + $0x20] sm:$0xff]  ;;  %v31_v52 = vld [vmem:[%s1716_s0 + $0x30] sm:$0xff]  ;;  %v32_v53 = vld [vmem:[%s1716_s0 + $0x38] sm:$0xff] }
   0x6   :  { %1326 = vmatprep.subr.bf16.mxu1 %v1446_v0  ;;  %1335 = vmatprep.subr.bf16.mxu0 %v1446_v0 }
   0x8   :  { %1209 = vmatmul.mubr.msk.f32.vlgmr.msra.gmra.mrb[0].mxu0 %vm42_vm0, %v26_v11 }
   0x9   :  { %1328 = vmatpush3.bf16.msra.mxu1 %v1522_v12  ;;  %1337 = vmatpush3.bf16.msra.mxu0 %v1509_v8 }
   0xa   :  { %1329 = vmatprep.subr.bf16.mxu1 %v1446_v0  ;;  %1338 = vmatprep.subr.bf16.mxu0 %v1446_v0 }
   0xb   :  { %1211 = vmatprep.mubr.msk.f32.mxu0 %vm42_vm0, %v27_v48 }
   0xc   :  { %1229 = vmatmul.mubr.f32.vlgmr.msra.gmra.mrb[0].mxu1 %v1448_v4  ;;  %1212 = vmatmul.mubr.msk.f32.gmra.mrb[2].mxu0 %vm42_vm0, %v28_v49 }
   0xd   :  { %1331 = vmatpush3.bf16.msra.mxu1 %v1509_v8  ;;  %1239 = vmatprep.mubr.msk.f32.mxu1 %vm1447_vm1, %v1448_v4 }
   0xe   :  { %1332 = vmatprep.subr.bf16.mxu1 %v1446_v0  ;;  %1340 = vmatpush3.bf16.msra.mxu0 %v1522_v12 }
   0xf   :  { %1347 = vmatprep.subr.bf16.mxu0 %v1446_v0  ;;  %1214 = vmatprep.mubr.msk.f32.mxu0 %vm42_vm0, %v29_v50 }
  0x10   :  { %1215 = vmatmul.mubr.msk.f32.gmra.mrb[4].mxu0 %vm42_vm0, %v30_v51 }
  0x11   :  { %1334 = vmatpush3.bf16.msra.mxu1 %v1522_v12  ;;  %1217 = vmatprep.mubr.msk.f32.mxu0 %vm42_vm0, %v31_v52 }
  0x12   :  { %1341 = vmatprep.subr.bf16.mxu1 %v1446_v0 }
  0x14   :  { %1218 = vmatmul.mubr.msk.f32.gmra.mrb[6].mxu0 %vm42_vm0, %v32_v53 }
  0x15   :  { %1250 = vmatprep.mubr.msk.f32.mxu0 %vm1447_vm1, %v1448_v4 }
  0xdb   :  { %v1210_v14 = vpop.f32.mrb[0].mxu0 }
  0xdc   :  { %v133_v15 = vpop.f32.mrb[1].mxu0  ;;  %v139_v34 = vadd.f32 %v1210_v14, %v1543_v13 }
  0xdd   :  { %v134_v16 = vadd.f32 %v1543_v13, %v133_v15 }
  0xdf   :  { %v255_v17 = vpop.f32.mrb[0].mxu1  ;;  %v1213_v57 = vpop.f32.mrb[2].mxu0 }
  0xe0   :  { %v259_v18 = vadd.f32 %v255_v17, %v134_v16  ;;  %v1230_v19 = vpop.f32.mrb[1].mxu1  ;;  %v143_v58 = vpop.f32.mrb[3].mxu0 }
  0xe1   :  { %v144_v1 = vadd.f32 %v1543_v13, %v143_v58 }
  0xe2   :  { %1382 = vtanh.f32 %v259_v18  ;;  %v1125_v21 = vmul.f32 -1.442695, %v259_v18 }
  0xe3   :  { %v1592_v59 = vpop.f32.mrb[4].mxu0 }
  0xe4   :  { %1384 = vpow2.f32 %v1125_v21  ;;  %v1594_v60 = vpop.f32.mrb[5].mxu0 }
  0xe7   :  { %v1596_v61 = vpop.f32.mrb[6].mxu0 }
  0xe8   :  { %v1598_v62 = vpop.f32.mrb[7].mxu0 }
  0xec   :  { %v1383_v20 = vpop.eup %1382 }
  0xed   :  { %269 = vrot.lane.b32.xlu0 %v1383_v20, %s1449_s17 }
  0xee   :  { %v1385_v22 = vpop.eup %1384 }
  0xef   :  { %v263_v23 = vadd.f32 1.0, %v1385_v22 }
  0xf1   :  { %1386 = vrcp.f32 %v263_v23  ;;  %v149_v23 = vadd.f32 %v1213_v57, %v1543_v13 }
  0xfb   :  { %v1387_v24 = vpop.eup %1386 }
  0xfc   :  { %v267_v27 = vmul.f32 0.0, %v1387_v24 }
 0x15f   :  { %v270_v25 = vpop.permute.xlu0 %269 }
 0x160   :  { %v272_v26 = vmul.f32 %v1387_v24, %v270_v25 }
 0x162   :  { %274 = vrot.lane.b32.xlu0 %v272_v26, %s1450_s3 }
 0x1d4   :  { %v275_v28 = vpop.permute.xlu0 %274 }
 0x1d5   :  { %v277_v29 = vadd.f32 %v275_v28, %v267_v27 }
 0x1d7   :  { %1388 = vtanh.f32 %v277_v29 }
 0x1e1   :  { %v1389_v30 = vpop.eup %1388 }
 0x1e2   :  { %280 = vrot.lane.b32.xlu1 %v1389_v30, %s1449_s17 }
 0x254   :  { %v281_v31 = vpop.permute.xlu1 %280 }
 0x255   :  { %v283_v32 = vmul.f32 %v1387_v24, %v281_v31 }
 0x257   :  { %285 = vrot.lane.b32.xlu1 %v283_v32, %s1450_s3 }
 0x2c9   :  { %v286_v33 = vpop.permute.xlu1 %285 }
 0x2ca   :  { %288 = vst.msk [vmem:[%s1718_s6] sm:$0xff] %vm185_vm2, %v286_v33  ;;  %1240 = vmatmul.mubr.msk.f32.vlgmr.msra.gmra.mrb[2].mxu1 %vm185_vm2, %v286_v33 }
 0x2cb   :  { %1343 = vmatpush3.bf16.msra.mxu1 %v1509_v8  ;;  %1261 = vmatprep.mubr.msk.f32.mxu1 %vm1447_vm1, %v1448_v4 }
 0x2cc   :  { %1344 = vmatprep.subr.bf16.mxu1 %v1446_v0 }
 0x2cf   :  { %1346 = vmatpush3.bf16.msra.mxu1 %v1522_v12 }
 0x2d0   :  { %1353 = vmatprep.subr.bf16.mxu1 %v1446_v0 }
 0x39d   :  { %v359_v35 = vpop.f32.mrb[2].mxu1 }
 0x39e   :  { %v363_v36 = vadd.f32 %v359_v35, %v139_v34  ;;  %v1241_v37 = vpop.f32.mrb[3].mxu1 }
 0x3a0   :  { %1390 = vtanh.f32 %v363_v36  ;;  %v1127_v39 = vmul.f32 -1.442695, %v363_v36 }
 0x3a2   :  { %1392 = vpow2.f32 %v1127_v39 }
 0x3aa   :  { %v1391_v38 = vpop.eup %1390 }
 0x3ab   :  { %373 = vrot.lane.b32.xlu0 %v1391_v38, %s1449_s17 }
 0x3ac   :  { %v1393_v40 = vpop.eup %1392 }
 0x3ad   :  { %v367_v41 = vadd.f32 1.0, %v1393_v40 }
 0x3af   :  { %1394 = vrcp.f32 %v367_v41  ;;  %v154_v41 = vadd.f32 %v1543_v13, %v1594_v60  ;;  %v159_v60 = vadd.f32 %v1592_v59, %v1543_v13 }
 0x3b9   :  { %v1395_v42 = vpop.eup %1394 }
 0x3ba   :  { %v371_v45 = vmul.f32 %v1395_v42, %v277_v29 }
 0x41d   :  { %v374_v43 = vpop.permute.xlu0 %373 }
 0x41e   :  { %v376_v44 = vmul.f32 %v1395_v42, %v374_v43 }
 0x420   :  { %378 = vrot.lane.b32.xlu1 %v376_v44, %s1450_s3 }
 0x492   :  { %v379_v46 = vpop.permute.xlu1 %378 }
 0x493   :  { %v381_v47 = vadd.f32 %v379_v46, %v371_v45 }
 0x495   :  { %1396 = vtanh.f32 %v381_v47 }
 0x49f   :  { %v1397_v54 = vpop.eup %1396 }
 0x4a0   :  { %384 = vrot.lane.b32.xlu0 %v1397_v54, %s1449_s17 }
 0x512   :  { %v385_v55 = vpop.permute.xlu0 %384 }
 0x513   :  { %v387_v56 = vmul.f32 %v1395_v42, %v385_v55 }
 0x515   :  { %389 = vrot.lane.b32.xlu1 %v387_v56, %s1450_s3 }
 0x587   :  { %v390_v63 = vpop.permute.xlu1 %389 }
 0x588   :  { %1128 = vst.msk [vmem:[%s1718_s6 + $0x8] sm:$0xff] %vm185_vm2, %v390_v63  ;;  %1251 = vmatmul.mubr.msk.f32.vlgmr.msra.gmra.mrb[8].mxu0 %vm185_vm2, %v390_v63 }
 0x589   :  { %1349 = vmatpush3.bf16.msra.mxu0 %v1509_v8  ;;  %1272 = vmatprep.mubr.msk.f32.mxu0 %vm1447_vm1, %v1448_v4 }
 0x58a   :  { %1350 = vmatprep.subr.bf16.mxu0 %v1446_v0 }
 0x58d   :  { %1352 = vmatpush3.bf16.msra.mxu0 %v1522_v12 }
 0x58e   :  { %1359 = vmatprep.subr.bf16.mxu0 %v1446_v0 }
 0x65b   :  { %v464_v2 = vpop.f32.mrb[8].mxu0 }
 0x65c   :  { %v468_v3 = vadd.f32 %v464_v2, %v144_v1  ;;  %v1252_v5 = vpop.f32.mrb[9].mxu0 }
 0x65e   :  { %1398 = vtanh.f32 %v468_v3  ;;  %v1130_v7 = vmul.f32 -1.442695, %v468_v3 }
 0x660   :  { %1400 = vpow2.f32 %v1130_v7 }
 0x668   :  { %v1399_v6 = vpop.eup %1398 }
 0x669   :  { %478 = vrot.lane.b32.xlu0 %v1399_v6, %s1449_s17 }
 0x66a   :  { %v1401_v9 = vpop.eup %1400 }
 0x66b   :  { %v472_v10 = vadd.f32 1.0, %v1401_v9 }
 0x66d   :  { %1402 = vrcp.f32 %v472_v10 }
 0x677   :  { %v1403_v11 = vpop.eup %1402 }
 0x678   :  { %v476_v16 = vmul.f32 %v1403_v11, %v381_v47 }
 0x6db   :  { %v479_v14 = vpop.permute.xlu0 %478 }
 0x6dc   :  { %v481_v15 = vmul.f32 %v1403_v11, %v479_v14 }
 0x6de   :  { %483 = vrot.lane.b32.xlu1 %v481_v15, %s1450_s3 }
 0x750   :  { %v484_v17 = vpop.permute.xlu1 %483 }
 0x751   :  { %v486_v18 = vadd.f32 %v484_v17, %v476_v16 }
 0x753   :  { %1404 = vtanh.f32 %v486_v18 }
 0x75d   :  { %v1405_v19 = vpop.eup %1404 }
 0x75e   :  { %489 = vrot.lane.b32.xlu0 %v1405_v19, %s1449_s17 }
 0x7d0   :  { %v490_v20 = vpop.permute.xlu0 %489 }
 0x7d1   :  { %v492_v21 = vmul.f32 %v1403_v11, %v490_v20 }
 0x7d3   :  { %494 = vrot.lane.b32.xlu1 %v492_v21, %s1450_s3 }
 0x845   :  { %v495_v22 = vpop.permute.xlu1 %494 }
 0x846   :  { %1131 = vst.msk [vmem:[%s1718_s6 + $0x10] sm:$0xff] %vm185_vm2, %v495_v22  ;;  %1262 = vmatmul.mubr.msk.f32.vlgmr.msra.gmra.mrb[4].mxu1 %vm185_vm2, %v495_v22 }
 0x847   :  { %1355 = vmatpush3.bf16.msra.mxu1 %v1509_v8  ;;  %1283 = vmatprep.mubr.msk.f32.mxu1 %vm1447_vm1, %v1448_v4 }
 0x848   :  { %1356 = vmatprep.subr.bf16.mxu1 %v1446_v0 }
 0x84b   :  { %1358 = vmatpush3.bf16.msra.mxu1 %v1522_v12 }
 0x84c   :  { %1365 = vmatprep.subr.bf16.mxu1 %v1446_v0 }
 0x919   :  { %v569_v24 = vpop.f32.mrb[4].mxu1 }
 0x91a   :  { %v573_v25 = vadd.f32 %v569_v24, %v149_v23  ;;  %v1263_v26 = vpop.f32.mrb[5].mxu1 }
 0x91c   :  { %1406 = vtanh.f32 %v573_v25  ;;  %v1133_v28 = vmul.f32 -1.442695, %v573_v25 }
 0x91e   :  { %1408 = vpow2.f32 %v1133_v28 }
 0x926   :  { %v1407_v27 = vpop.eup %1406 }
 0x927   :  { %583 = vrot.lane.b32.xlu0 %v1407_v27, %s1449_s17 }
 0x928   :  { %v1409_v29 = vpop.eup %1408 }
 0x929   :  { %v577_v30 = vadd.f32 1.0, %v1409_v29 }
 0x92b   :  { %1410 = vrcp.f32 %v577_v30 }
 0x935   :  { %v1411_v31 = vpop.eup %1410 }
 0x936   :  { %v581_v34 = vmul.f32 %v1411_v31, %v486_v18  ;;  %v164_v18 = vadd.f32 %v1543_v13, %v1598_v62 }
 0x999   :  { %v584_v32 = vpop.permute.xlu0 %583 }
 0x99a   :  { %v586_v33 = vmul.f32 %v1411_v31, %v584_v32 }
 0x99c   :  { %588 = vrot.lane.b32.xlu1 %v586_v33, %s1450_s3 }
 0xa0e   :  { %v589_v35 = vpop.permute.xlu1 %588 }
 0xa0f   :  { %v591_v36 = vadd.f32 %v589_v35, %v581_v34  ;;  %v169_v34 = vadd.f32 %v1596_v61, %v1543_v13  ;;  %v1024_v61 = vld [vmem:[%s1719_s4] sm:$0xff] }
 0xa11   :  { %1412 = vtanh.f32 %v591_v36 }
 0xa1b   :  { %v1413_v37 = vpop.eup %1412 }
 0xa1c   :  { %594 = vrot.lane.b32.xlu0 %v1413_v37, %s1449_s17 }
 0xa8e   :  { %v595_v38 = vpop.permute.xlu0 %594 }
 0xa8f   :  { %v597_v39 = vmul.f32 %v1411_v31, %v595_v38 }
 0xa91   :  { %599 = vrot.lane.b32.xlu1 %v597_v39, %s1450_s3 }
 0xb03   :  { %v600_v40 = vpop.permute.xlu1 %599 }
 0xb04   :  { %1134 = vst.msk [vmem:[%s1718_s6 + $0x18] sm:$0xff] %vm185_vm2, %v600_v40  ;;  %1273 = vmatmul.mubr.msk.f32.vlgmr.msra.gmra.mrb[10].mxu0 %vm185_vm2, %v600_v40 }
 0xb05   :  { %1361 = vmatpush3.bf16.msra.mxu0 %v1509_v8  ;;  %1294 = vmatprep.mubr.msk.f32.mxu0 %vm1447_vm1, %v1448_v4 }
 0xb06   :  { %1362 = vmatprep.subr.bf16.mxu0 %v1446_v0 }
 0xb09   :  { %1364 = vmatpush3.bf16.msra.mxu0 %v1522_v12 }
 0xb0a   :  { %1371 = vmatprep.subr.bf16.mxu0 %v1446_v0 }
 0xbd7   :  { %v674_v42 = vpop.f32.mrb[10].mxu0 }
 0xbd8   :  { %v678_v43 = vadd.f32 %v674_v42, %v154_v41  ;;  %v1274_v44 = vpop.f32.mrb[11].mxu0 }
 0xbda   :  { %1414 = vtanh.f32 %v678_v43  ;;  %v1136_v46 = vmul.f32 -1.442695, %v678_v43 }
 0xbdc   :  { %1416 = vpow2.f32 %v1136_v46 }
 0xbe4   :  { %v1415_v45 = vpop.eup %1414 }
 0xbe5   :  { %688 = vrot.lane.b32.xlu0 %v1415_v45, %s1449_s17 }
 0xbe6   :  { %v1417_v47 = vpop.eup %1416 }
 0xbe7   :  { %v682_v48 = vadd.f32 1.0, %v1417_v47  ;;  %v1025_v47 = vld [vmem:[%s1719_s4 + $0x8] sm:$0xff] }
 0xbe9   :  { %1418 = vrcp.f32 %v682_v48  ;;  %v1026_v48 = vld [vmem:[%s1719_s4 + $0x10] sm:$0xff] }
 0xbf3   :  { %v1419_v49 = vpop.eup %1418 }
 0xbf4   :  { %v686_v52 = vmul.f32 %v1419_v49, %v591_v36 }
 0xc57   :  { %v689_v50 = vpop.permute.xlu0 %688 }
 0xc58   :  { %v691_v51 = vmul.f32 %v1419_v49, %v689_v50  ;;  %v1027_v50 = vld [vmem:[%s1719_s4 + $0x18] sm:$0xff] }
 0xc5a   :  { %693 = vrot.lane.b32.xlu1 %v691_v51, %s1450_s3  ;;  %v1375_v51 = vpack.c.bf16 %v1027_v50, %v1026_v48 }
 0xccc   :  { %v694_v53 = vpop.permute.xlu1 %693 }
 0xccd   :  { %v696_v54 = vadd.f32 %v694_v53, %v686_v52 }
 0xccf   :  { %1420 = vtanh.f32 %v696_v54 }
 0xcd9   :  { %v1421_v55 = vpop.eup %1420 }
 0xcda   :  { %699 = vrot.lane.b32.xlu0 %v1421_v55, %s1449_s17 }
 0xd4c   :  { %v700_v56 = vpop.permute.xlu0 %699 }
 0xd4d   :  { %v702_v57 = vmul.f32 %v1419_v49, %v700_v56  ;;  %v1372_v49 = vpack.c.bf16 %v1025_v47, %v1024_v61 }
 0xd4f   :  { %704 = vrot.lane.b32.xlu1 %v702_v57, %s1450_s3 }
 0xdc1   :  { %v705_v58 = vpop.permute.xlu1 %704 }
 0xdc2   :  { %1137 = vst.msk [vmem:[%s1718_s6 + $0x20] sm:$0xff] %vm185_vm2, %v705_v58  ;;  %1284 = vmatmul.mubr.msk.f32.vlgmr.msra.gmra.mrb[6].mxu1 %vm185_vm2, %v705_v58 }
 0xdc3   :  { %1367 = vmatpush3.bf16.msra.mxu1 %v1509_v8  ;;  %1305 = vmatprep.mubr.msk.f32.mxu1 %vm1447_vm1, %v1448_v4 }
 0xdc4   :  { %1368 = vmatprep.subr.bf16.mxu1 %v1446_v0 }
 0xdc7   :  { %1370 = vmatpush3.bf16.msra.mxu1 %v1522_v12 }
 0xe95   :  { %v779_v63 = vpop.f32.mrb[6].mxu1 }
 0xe96   :  { %v783_v1 = vadd.f32 %v779_v63, %v159_v60  ;;  %v1285_v2 = vpop.f32.mrb[7].mxu1 }
 0xe98   :  { %1422 = vtanh.f32 %v783_v1  ;;  %v1139_v5 = vmul.f32 -1.442695, %v783_v1 }
 0xe9a   :  { %1424 = vpow2.f32 %v1139_v5 }
 0xea2   :  { %v1423_v3 = vpop.eup %1422 }
 0xea3   :  { %793 = vrot.lane.b32.xlu0 %v1423_v3, %s1449_s17 }
 0xea4   :  { %v1425_v8 = vpop.eup %1424 }
 0xea5   :  { %v787_v6 = vadd.f32 1.0, %v1425_v8 }
 0xea7   :  { %1426 = vrcp.f32 %v787_v6 }
 0xeb1   :  { %v1427_v7 = vpop.eup %1426 }
 0xeb2   :  { %v791_v12 = vmul.f32 %v1427_v7, %v696_v54 }
 0xf15   :  { %v794_v9 = vpop.permute.xlu0 %793 }
 0xf16   :  { %v796_v10 = vmul.f32 %v1427_v7, %v794_v9 }
 0xf18   :  { %798 = vrot.lane.b32.xlu1 %v796_v10, %s1450_s3 }
 0xf8a   :  { %v799_v11 = vpop.permute.xlu1 %798 }
 0xf8b   :  { %v801_v59 = vadd.f32 %v799_v11, %v791_v12 }
 0xf8d   :  { %1428 = vtanh.f32 %v801_v59 }
 0xf97   :  { %v1429_v14 = vpop.eup %1428 }
 0xf98   :  { %804 = vrot.lane.b32.xlu0 %v1429_v14, %s1449_s17 }
0x100a   :  { %v805_v15 = vpop.permute.xlu0 %804 }
0x100b   :  { %v807_v16 = vmul.f32 %v1427_v7, %v805_v15 }
0x100d   :  { %809 = vrot.lane.b32.xlu1 %v807_v16, %s1450_s3 }
0x107f   :  { %v810_v17 = vpop.permute.xlu1 %809 }
0x1080   :  { %1140 = vst.msk [vmem:[%s1718_s6 + $0x28] sm:$0xff] %vm185_vm2, %v810_v17  ;;  %1295 = vmatmul.mubr.msk.f32.vlgmr.msra.gmra.mrb[12].mxu0 %vm185_vm2, %v810_v17 }
0x1081   :  { %1316 = vmatprep.mubr.msk.f32.mxu0 %vm1447_vm1, %v1448_v4  ;;  %1373 = vmatpush3.bf16.msra.mxu0 %v1372_v49 }
0x1082   :  { %1374 = vmatprep.subr.bf16.mxu0 %v1446_v0  ;;  %v1147_v0 = vld [vmem:[%s1720_s5] ss:$0 sm:$0xff] }
0x1085   :  { %1376 = vmatpush3.bf16.msra.mxu0 %v1375_v51 }
0x1153   :  { %v884_v19 = vpop.f32.mrb[12].mxu0 }
0x1154   :  { %v888_v20 = vadd.f32 %v884_v19, %v164_v18  ;;  %v1296_v21 = vpop.f32.mrb[13].mxu0 }
0x1156   :  { %1430 = vtanh.f32 %v888_v20  ;;  %v1142_v23 = vmul.f32 -1.442695, %v888_v20 }
0x1158   :  { %1432 = vpow2.f32 %v1142_v23 }
0x1160   :  { %v1431_v22 = vpop.eup %1430 }
0x1161   :  { %898 = vrot.lane.b32.xlu0 %v1431_v22, %s1449_s17 }
0x1162   :  { %v1433_v24 = vpop.eup %1432 }
0x1163   :  { %v892_v25 = vadd.f32 1.0, %v1433_v24 }
0x1165   :  { %1434 = vrcp.f32 %v892_v25 }
0x116f   :  { %v1435_v26 = vpop.eup %1434 }
0x1170   :  { %v896_v4 = vmul.f32 %v1435_v26, %v801_v59 }
0x11d3   :  { %v899_v27 = vpop.permute.xlu0 %898 }
0x11d4   :  { %v901_v28 = vmul.f32 %v1435_v26, %v899_v27 }
0x11d6   :  { %903 = vrot.lane.b32.xlu1 %v901_v28, %s1450_s3 }
0x1248   :  { %v904_v29 = vpop.permute.xlu1 %903 }
0x1249   :  { %v906_v62 = vadd.f32 %v904_v29, %v896_v4 }
0x124b   :  { %1436 = vtanh.f32 %v906_v62 }
0x1255   :  { %v1437_v30 = vpop.eup %1436 }
0x1256   :  { %909 = vrot.lane.b32.xlu0 %v1437_v30, %s1449_s17 }
0x12c8   :  { %v910_v31 = vpop.permute.xlu0 %909 }
0x12c9   :  { %v912_v32 = vmul.f32 %v1435_v26, %v910_v31 }
0x12cb   :  { %914 = vrot.lane.b32.xlu1 %v912_v32, %s1450_s3 }
0x133d   :  { %v915_v33 = vpop.permute.xlu1 %914 }
0x133e   :  { %1143 = vst.msk [vmem:[%s1718_s6 + $0x30] sm:$0xff] %vm185_vm2, %v915_v33  ;;  %1306 = vmatmul.mubr.msk.f32.vlgmr.msra.gmra.mrb[8].mxu1 %vm185_vm2, %v915_v33 }
0x1411   :  { %v989_v35 = vpop.f32.mrb[8].mxu1 }
0x1412   :  { %v993_v36 = vadd.f32 %v989_v35, %v169_v34  ;;  %v1307_v37 = vpop.f32.mrb[9].mxu1 }
0x1414   :  { %1438 = vtanh.f32 %v993_v36  ;;  %v1145_v39 = vmul.f32 -1.442695, %v993_v36 }
0x1416   :  { %1440 = vpow2.f32 %v1145_v39 }
0x141e   :  { %v1439_v38 = vpop.eup %1438 }
0x141f   :  { %1003 = vrot.lane.b32.xlu0 %v1439_v38, %s1449_s17 }
0x1420   :  { %v1441_v40 = vpop.eup %1440 }
0x1421   :  { %v997_v41 = vadd.f32 1.0, %v1441_v40 }
0x1423   :  { %1442 = vrcp.f32 %v997_v41 }
0x142d   :  { %v1443_v42 = vpop.eup %1442 }
0x142e   :  { %v1001_v45 = vmul.f32 %v1443_v42, %v906_v62 }
0x1491   :  { %v1004_v43 = vpop.permute.xlu0 %1003 }
0x1492   :  { %v1006_v44 = vmul.f32 %v1443_v42, %v1004_v43 }
0x1494   :  { %1008 = vrot.lane.b32.xlu1 %v1006_v44, %s1450_s3 }
0x1506   :  { %v1009_v46 = vpop.permute.xlu1 %1008 }
0x1507   :  { %v1011_v13 = vadd.f32 %v1009_v46, %v1001_v45 }
0x1509   :  { %1444 = vtanh.f32 %v1011_v13 }
0x1513   :  { %v1445_v52 = vpop.eup %1444 }
0x1514   :  { %1014 = vrot.lane.b32.xlu0 %v1445_v52, %s1449_s17 }
0x1586   :  { %v1015_v53 = vpop.permute.xlu0 %1014 }
0x1587   :  { %v1017_v54 = vmul.f32 %v1443_v42, %v1015_v53 }
0x1589   :  { %1019 = vrot.lane.b32.xlu1 %v1017_v54, %s1450_s3 }
0x15fb   :  { %v1020_v55 = vpop.permute.xlu1 %1019 }
0x15fc   :  { %1146 = vst.msk [vmem:[%s1718_s6 + $0x38] sm:$0xff] %vm185_vm2, %v1020_v55  ;;  %1317 = vmatmul.mubr.msk.f32.vlgmr.msra.gmra.mrb[14].mxu0 %vm185_vm2, %v1020_v55 }
0x16cf   :  { %v1103_v56 = vpop.f32.mrb[14].mxu0 }
0x16d0   :  { %v1104_v57 = vadd.f32 %v1147_v0, %v1103_v56  ;;  %v1318_v58 = vpop.f32.mrb[15].mxu0 }
0x16d2   :  { %1107 = vst.msk [vmem:[%s1721_s7] sm:$0xff] %vm42_vm0, %v1104_v57 }

</bundles_post_ra>
